<compile_context>
chip_gen: v6e
topology: v6e:2x2x1
jax: 0.10.0
libtpu: 0.0.40
codegen_flags: <defaults>
</compile_context>

<pallas_src>
import functools

import jax
import jax.numpy as jnp
from jax.experimental import pallas as pl
from jax.experimental.pallas import tpu as pltpu

HIDDEN = 128      # hidden width fixed by the module
LANE = 128        # TPU lane width
TB_MAX = 128      # max batch tile (>=2 tiles for batch >= 256 -> v7x dual-core)
TK_MAX = 4096     # max K-tile for the layer-1 reduction (K-tiled path)
MIB = 1024 * 1024


def _round_up(x: int, m: int) -> int:
    return (x + m - 1) // m * m


def _pick_tk(d_pad: int) -> int:
    """Largest multiple of 128 that divides d_pad and is <= TK_MAX."""
    m = d_pad // LANE
    best = 1
    for d in range(1, min(m, TK_MAX // LANE) + 1):
        if m % d == 0:
            best = d
    return best * LANE


def _vmem_capacity_bytes() -> int:
    try:
        cap = int(pltpu.get_tpu_info().vmem_capacity_bytes)
        if cap > 0:
            return cap
    except Exception:
        pass
    return 64 * MIB  # conservative fallback (v7x per-TC VMEM)


# --------------------------------------------------------------------------- kernels
def mlp_kernel_resident(x_ref, w1_ref, b1_ref, w2_ref, b2_ref, w3_ref, b3_ref, o_ref):
    # layer 1: (tb, d_pad)f32 -> bf16 cast in-kernel, full-K dot, f32 accumulate
    h1 = jnp.dot(x_ref[...].astype(jnp.bfloat16), w1_ref[...],
                 preferred_element_type=jnp.float32) + b1_ref[...]
    h1 = jnp.maximum(h1, 0.0)
    h2 = jnp.dot(h1.astype(jnp.bfloat16), w2_ref[...],
                 preferred_element_type=jnp.float32) + b2_ref[...]
    h2 = jnp.maximum(h2, 0.0)
    logits = jnp.dot(h2.astype(jnp.bfloat16), w3_ref[...],
                     preferred_element_type=jnp.float32) + b3_ref[...]
    o_ref[...] = logits.astype(o_ref.dtype)


def mlp_kernel_ktiled(x_ref, w1_ref, b1_ref, w2_ref, b2_ref, w3_ref, b3_ref, o_ref, acc_ref):
    k = pl.program_id(1)

    @pl.when(k == 0)
    def _():
        acc_ref[...] = jnp.zeros_like(acc_ref)

    # layer 1 partial product: (tb, tk)f32 cast to bf16 in-kernel @ (tk, 128)bf16 -> f32 acc
    acc_ref[...] += jnp.dot(x_ref[...].astype(jnp.bfloat16), w1_ref[...],
                            preferred_element_type=jnp.float32)

    @pl.when(k == pl.num_programs(1) - 1)
    def _():
        h1 = jnp.maximum(acc_ref[...] + b1_ref[...], 0.0)
        h2 = jnp.dot(h1.astype(jnp.bfloat16), w2_ref[...],
                     preferred_element_type=jnp.float32) + b2_ref[...]
        h2 = jnp.maximum(h2, 0.0)
        logits = jnp.dot(h2.astype(jnp.bfloat16), w3_ref[...],
                         preferred_element_type=jnp.float32) + b3_ref[...]
        o_ref[...] = logits.astype(o_ref.dtype)


# --------------------------------------------------------------------------- wrapper
def prepare_params(params):
    """One-time weight prep (pad + bf16 cast); reuse the result across forward calls."""
    w1, b1, w2, b2, w3, b3 = params
    in_dim, hidden = w1.shape
    num_classes = w3.shape[1]
    assert hidden == HIDDEN and w2.shape == (HIDDEN, HIDDEN) and w3.shape[0] == HIDDEN
    d_pad = _round_up(in_dim, LANE)
    c_pad = _round_up(num_classes, LANE)

    w1_p = jnp.zeros((d_pad, HIDDEN), jnp.bfloat16).at[:in_dim, :].set(w1.astype(jnp.bfloat16))
    w2_b = w2.astype(jnp.bfloat16)
    w3_p = jnp.zeros((HIDDEN, c_pad), jnp.bfloat16).at[:, :num_classes].set(w3.astype(jnp.bfloat16))
    b1_f = b1.astype(jnp.float32).reshape(1, HIDDEN)
    b2_f = b2.astype(jnp.float32).reshape(1, HIDDEN)
    b3_p = jnp.zeros((1, c_pad), jnp.float32).at[:, :num_classes].set(
        b3.astype(jnp.float32).reshape(1, num_classes))
    return (w1_p, b1_f, w2_b, b2_f, w3_p, b3_p)


@functools.partial(jax.jit, static_argnames=("num_classes",))
def mlp_classifier_forward(x_nchw, prepared, *, num_classes):
    """x_nchw: (b, 3, H, W) float32. prepared: output of prepare_params.
    Returns (b, num_classes) float32 logits."""
    w1_p, b1_f, w2_b, b2_f, w3_p, b3_p = prepared
    b = x_nchw.shape[0]
    in_dim = x_nchw.shape[1] * x_nchw.shape[2] * x_nchw.shape[3]
    d_pad = w1_p.shape[0]
    c_pad = w3_p.shape[1]
    assert d_pad == _round_up(in_dim, LANE), "prepared params do not match input feature size"

    # flatten exactly like torch's x.view(b, -1) on NCHW; keep f32 (cast to bf16 inside kernel)
    x_flat = x_nchw.reshape(b, in_dim)

    # ---- batch tiling -------------------------------------------------------
    b16 = _round_up(b, 16)
    if b16 <= TB_MAX:
        tb = b16
        b_pad = b16
    else:
        tb = TB_MAX
        b_pad = _round_up(b, tb)
    nb = b_pad // tb

    # pad only when shapes require it (padded K columns hit zero rows of w1 -> values irrelevant;
    # padded batch rows produce garbage logits that are sliced off below)
    if b_pad != b or d_pad != in_dim:
        x_flat = jnp.pad(x_flat, ((0, b_pad - b), (0, d_pad - in_dim)))

    # ---- residency / K-tiling decision (generation-aware) -------------------
    tk = _pick_tk(d_pad)
    nk = d_pad // tk
    cap = _vmem_capacity_bytes()

    bytes_small = 2 * (HIDDEN * HIDDEN * 2 + HIDDEN * c_pad * 2
                       + 2 * HIDDEN * 4 + c_pad * 4)          # w2, w3, biases (double-buffered)
    resident_bytes = (2 * tb * d_pad * 4                      # x tile (f32, double-buffered)
                      + 2 * d_pad * HIDDEN * 2                # w1 resident (worst case 2 bufs)
                      + 2 * tb * c_pad * 4                    # out tile
                      + bytes_small)
    tiled_bytes = (2 * tb * tk * 4 + 2 * tk * HIDDEN * 2
                   + 2 * tb * c_pad * 4 + tb * HIDDEN * 4 + bytes_small)

    use_resident = (nk == 1) or (resident_bytes <= int(0.7 * cap))

    def _limit(needed):
        return int(min(0.85 * cap, max(32 * MIB, needed + 8 * MIB)))

    if use_resident:
        out_padded = pl.pallas_call(
            mlp_kernel_resident,
            out_shape=jax.ShapeDtypeStruct((b_pad, c_pad), jnp.float32),
            grid_spec=pltpu.PrefetchScalarGridSpec(
                num_scalar_prefetch=0,
                grid=(nb,),
                in_specs=[
                    pl.BlockSpec((tb, d_pad), lambda i: (i, 0)),          # x: streamed per batch tile
                    pl.BlockSpec((d_pad, HIDDEN), lambda i: (0, 0)),      # w1: fully resident
                    pl.BlockSpec((1, HIDDEN), lambda i: (0, 0)),          # b1
                    pl.BlockSpec((HIDDEN, HIDDEN), lambda i: (0, 0)),     # w2
                    pl.BlockSpec((1, HIDDEN), lambda i: (0, 0)),          # b2
                    pl.BlockSpec((HIDDEN, c_pad), lambda i: (0, 0)),      # w3 (lane-padded)
                    pl.BlockSpec((1, c_pad), lambda i: (0, 0)),           # b3 (lane-padded)
                ],
                out_specs=pl.BlockSpec((tb, c_pad), lambda i: (i, 0)),    # lane-dense output tile
            ),
            compiler_params=pltpu.CompilerParams(
                dimension_semantics=("parallel",),
                vmem_limit_bytes=_limit(resident_bytes),
            ),
        )(x_flat, w1_p, b1_f, w2_b, b2_f, w3_p, b3_p)
    else:
        out_padded = pl.pallas_call(
            mlp_kernel_ktiled,
            out_shape=jax.ShapeDtypeStruct((b_pad, c_pad), jnp.float32),
            grid_spec=pltpu.PrefetchScalarGridSpec(
                num_scalar_prefetch=0,
                grid=(nb, nk),
                in_specs=[
                    pl.BlockSpec((tb, tk), lambda i, k: (i, k)),          # x: (batch, K) tiles
                    pl.BlockSpec((tk, HIDDEN), lambda i, k: (k, 0)),      # w1: K-tiled
                    pl.BlockSpec((1, HIDDEN), lambda i, k: (0, 0)),       # b1
                    pl.BlockSpec((HIDDEN, HIDDEN), lambda i, k: (0, 0)),  # w2
                    pl.BlockSpec((1, HIDDEN), lambda i, k: (0, 0)),       # b2
                    pl.BlockSpec((HIDDEN, c_pad), lambda i, k: (0, 0)),   # w3
                    pl.BlockSpec((1, c_pad), lambda i, k: (0, 0)),        # b3
                ],
                out_specs=pl.BlockSpec((tb, c_pad), lambda i, k: (i, 0)),
                scratch_shapes=[pltpu.VMEM((tb, HIDDEN), jnp.float32)],   # layer-1 f32 accumulator
            ),
            compiler_params=pltpu.CompilerParams(
                dimension_semantics=("parallel", "arbitrary"),
                vmem_limit_bytes=_limit(tiled_bytes),
            ),
        )(x_flat, w1_p, b1_f, w2_b, b2_f, w3_p, b3_p)

    return out_padded[:b, :num_classes]


# --------------------------------------------------------------------------- params / test
def init_params(key, in_dim, hidden, num_classes):
    k1, k2, k3, k4, k5, k6 = jax.random.split(key, 6)
    scale1 = 1.0 / jnp.sqrt(in_dim)
    scale2 = 1.0 / jnp.sqrt(hidden)
    w1 = jax.random.uniform(k1, (in_dim, hidden), jnp.float32, -scale1, scale1)
    b1 = jax.random.uniform(k2, (1, hidden), jnp.float32, -scale1, scale1)
    w2 = jax.random.uniform(k3, (hidden, hidden), jnp.float32, -scale2, scale2)
    b2 = jax.random.uniform(k4, (1, hidden), jnp.float32, -scale2, scale2)
    w3 = jax.random.uniform(k5, (hidden, num_classes), jnp.float32, -scale2, scale2)
    b3 = jax.random.uniform(k6, (1, num_classes), jnp.float32, -scale2, scale2)
    return (w1, b1, w2, b2, w3, b3)


if __name__ == "__main__":
    # small shapes consistent with the module: batch=2, image (3, 16, 16), hidden=128, classes=6
    B, C, H, W = 2, 3, 16, 16
    NUM_CLASSES = 6
    IN_DIM = C * H * W  # 768

    key = jax.random.PRNGKey(0)
    kx, kp = jax.random.split(key)
    x = jax.random.normal(kx, (B, C, H, W), jnp.float32)
    params = init_params(kp, IN_DIM, HIDDEN, NUM_CLASSES)

    prepared = prepare_params(params)          # one-time weight pad/cast
    logits = mlp_classifier_forward(x, prepared, num_classes=NUM_CLASSES)
    logits = jax.block_until_ready(logits)

    # reference with the same bf16 input rounding / f32 accumulation as the kernel
    w1, b1, w2, b2, w3, b3 = params
    bf = lambda a: a.astype(jnp.bfloat16).astype(jnp.float32)
    xf = bf(x.reshape(B, -1))
    h1 = jnp.maximum(xf @ bf(w1) + b1, 0.0)
    h2 = jnp.maximum(bf(h1) @ bf(w2) + b2, 0.0)
    ref = bf(h2) @ bf(w3) + b3

    assert logits.shape == (B, NUM_CLASSES)
    assert jnp.allclose(logits, ref, atol=2e-2, rtol=2e-2), (
        f"max abs diff {jnp.max(jnp.abs(logits - ref))}")

    print("KERNEL_OK")
</pallas_src>

<mosaic_0001>
module attributes {stable_mosaic.version = 11 : i64} {
  func.func @mlp_kernel_resident(%arg0: i32, %arg1: memref<16x768xf32, #tpu.memory_space<vmem>>, %arg2: memref<768x128xbf16, #tpu.memory_space<vmem>>, %arg3: memref<1x128xf32, #tpu.memory_space<vmem>>, %arg4: memref<128x128xbf16, #tpu.memory_space<vmem>>, %arg5: memref<1x128xf32, #tpu.memory_space<vmem>>, %arg6: memref<128x128xbf16, #tpu.memory_space<vmem>>, %arg7: memref<1x128xf32, #tpu.memory_space<vmem>>, %arg8: memref<16x128xf32, #tpu.memory_space<vmem>>) attributes {dimension_semantics = [#tpu.dimension_semantics<parallel>], iteration_bounds = array<i64: 1>, scalar_prefetch = 0 : i64, scratch_operands = 0 : i64, tpu.core_type = #tpu.core_type<tc>, window_params = [{transform_indices = @transform_0, window_bounds = array<i64: 16, 768>}, {pipeline_mode = #tpu.pipeline_mode<synchronous>, transform_indices = @transform_1, window_bounds = array<i64: 768, 128>}, {pipeline_mode = #tpu.pipeline_mode<synchronous>, transform_indices = @transform_2, window_bounds = array<i64: 1, 128>}, {pipeline_mode = #tpu.pipeline_mode<synchronous>, transform_indices = @transform_3, window_bounds = array<i64: 128, 128>}, {pipeline_mode = #tpu.pipeline_mode<synchronous>, transform_indices = @transform_4, window_bounds = array<i64: 1, 128>}, {pipeline_mode = #tpu.pipeline_mode<synchronous>, transform_indices = @transform_5, window_bounds = array<i64: 128, 128>}, {pipeline_mode = #tpu.pipeline_mode<synchronous>, transform_indices = @transform_6, window_bounds = array<i64: 1, 128>}, {transform_indices = @transform_7, window_bounds = array<i64: 16, 128>}]} {
    %c0 = arith.constant 0 : index
    %c0_0 = arith.constant 0 : index
    %0 = vector.load %arg1[%c0, %c0_0] : memref<16x768xf32, #tpu.memory_space<vmem>>, vector<16x768xf32>
    %1 = arith.truncf %0 : vector<16x768xf32> to vector<16x768xbf16>
    %c0_1 = arith.constant 0 : index
    %c0_2 = arith.constant 0 : index
    %2 = vector.load %arg2[%c0_1, %c0_2] : memref<768x128xbf16, #tpu.memory_space<vmem>>, vector<768x128xbf16>
    %cst = arith.constant dense<0.000000e+00> : vector<16x128xf32>
    %3 = tpu.matmul %1, %2, %cst {dimension_numbers = #tpu.dot_dimension_numbers<[1], [0], [0], [1], [0, 0, 1, 1], [], []>} : vector<16x768xbf16>, vector<768x128xbf16>, vector<16x128xf32> -> vector<16x128xf32>
    %c0_3 = arith.constant 0 : index
    %c0_4 = arith.constant 0 : index
    %4 = vector.load %arg3[%c0_3, %c0_4] : memref<1x128xf32, #tpu.memory_space<vmem>>, vector<1x128xf32>
    %5 = vector.broadcast %4 : vector<1x128xf32> to vector<16x128xf32>
    %6 = arith.addf %3, %5 : vector<16x128xf32>
    %cst_5 = arith.constant 0.000000e+00 : f32
    %7 = vector.broadcast %cst_5 : f32 to vector<16x128xf32>
    %8 = arith.maximumf %6, %7 : vector<16x128xf32>
    %9 = arith.truncf %8 : vector<16x128xf32> to vector<16x128xbf16>
    %c0_6 = arith.constant 0 : index
    %c0_7 = arith.constant 0 : index
    %10 = vector.load %arg4[%c0_6, %c0_7] : memref<128x128xbf16, #tpu.memory_space<vmem>>, vector<128x128xbf16>
    %cst_8 = arith.constant dense<0.000000e+00> : vector<16x128xf32>
    %11 = tpu.matmul %9, %10, %cst_8 {dimension_numbers = #tpu.dot_dimension_numbers<[1], [0], [0], [1], [0, 0, 1, 1], [], []>} : vector<16x128xbf16>, vector<128x128xbf16>, vector<16x128xf32> -> vector<16x128xf32>
    %c0_9 = arith.constant 0 : index
    %c0_10 = arith.constant 0 : index
    %12 = vector.load %arg5[%c0_9, %c0_10] : memref<1x128xf32, #tpu.memory_space<vmem>>, vector<1x128xf32>
    %13 = vector.broadcast %12 : vector<1x128xf32> to vector<16x128xf32>
    %14 = arith.addf %11, %13 : vector<16x128xf32>
    %cst_11 = arith.constant 0.000000e+00 : f32
    %15 = vector.broadcast %cst_11 : f32 to vector<16x128xf32>
    %16 = arith.maximumf %14, %15 : vector<16x128xf32>
    %17 = arith.truncf %16 : vector<16x128xf32> to vector<16x128xbf16>
    %c0_12 = arith.constant 0 : index
    %c0_13 = arith.constant 0 : index
    %18 = vector.load %arg6[%c0_12, %c0_13] : memref<128x128xbf16, #tpu.memory_space<vmem>>, vector<128x128xbf16>
    %cst_14 = arith.constant dense<0.000000e+00> : vector<16x128xf32>
    %19 = tpu.matmul %17, %18, %cst_14 {dimension_numbers = #tpu.dot_dimension_numbers<[1], [0], [0], [1], [0, 0, 1, 1], [], []>} : vector<16x128xbf16>, vector<128x128xbf16>, vector<16x128xf32> -> vector<16x128xf32>
    %c0_15 = arith.constant 0 : index
    %c0_16 = arith.constant 0 : index
    %20 = vector.load %arg7[%c0_15, %c0_16] : memref<1x128xf32, #tpu.memory_space<vmem>>, vector<1x128xf32>
    %21 = vector.broadcast %20 : vector<1x128xf32> to vector<16x128xf32>
    %22 = arith.addf %19, %21 : vector<16x128xf32>
    %c0_17 = arith.constant 0 : index
    %c0_18 = arith.constant 0 : index
    %23 = vector.load %arg8[%c0_17, %c0_18] : memref<16x128xf32, #tpu.memory_space<vmem>>, vector<16x128xf32>
    tpu.vector_store %arg8[%c0_17, %c0_18], %22 {strides = array<i32>} : memref<16x128xf32, #tpu.memory_space<vmem>>, vector<16x128xf32>,
    return
  }
  func.func @transform_0(%arg0: i32) -> (i32, i32) {
    %c0_i32 = arith.constant 0 : i32
    %c0_i32_0 = arith.constant 0 : i32
    return %arg0, %c0_i32 : i32, i32
  }
  func.func @transform_1(%arg0: i32) -> (i32, i32) {
    %c0_i32 = arith.constant 0 : i32
    %c0_i32_0 = arith.constant 0 : i32
    %c0_i32_1 = arith.constant 0 : i32
    return %c0_i32, %c0_i32_0 : i32, i32
  }
  func.func @transform_2(%arg0: i32) -> (i32, i32) {
    %c0_i32 = arith.constant 0 : i32
    %c0_i32_0 = arith.constant 0 : i32
    %c0_i32_1 = arith.constant 0 : i32
    return %c0_i32, %c0_i32_0 : i32, i32
  }
  func.func @transform_3(%arg0: i32) -> (i32, i32) {
    %c0_i32 = arith.constant 0 : i32
    %c0_i32_0 = arith.constant 0 : i32
    %c0_i32_1 = arith.constant 0 : i32
    return %c0_i32, %c0_i32_0 : i32, i32
  }
  func.func @transform_4(%arg0: i32) -> (i32, i32) {
    %c0_i32 = arith.constant 0 : i32
    %c0_i32_0 = arith.constant 0 : i32
    %c0_i32_1 = arith.constant 0 : i32
    return %c0_i32, %c0_i32_0 : i32, i32
  }
  func.func @transform_5(%arg0: i32) -> (i32, i32) {
    %c0_i32 = arith.constant 0 : i32
    %c0_i32_0 = arith.constant 0 : i32
    %c0_i32_1 = arith.constant 0 : i32
    return %c0_i32, %c0_i32_0 : i32, i32
  }
  func.func @transform_6(%arg0: i32) -> (i32, i32) {
    %c0_i32 = arith.constant 0 : i32
    %c0_i32_0 = arith.constant 0 : i32
    %c0_i32_1 = arith.constant 0 : i32
    return %c0_i32, %c0_i32_0 : i32, i32
  }
  func.func @transform_7(%arg0: i32) -> (i32, i32) {
    %c0_i32 = arith.constant 0 : i32
    %c0_i32_0 = arith.constant 0 : i32
    return %arg0, %c0_i32 : i32, i32
  }
}

</mosaic_0001>

<bundles_post_ra>
// kernel: mlp_classifier_forward.1
= control target key start
LH: loop header
LB: loop body
LE: loop exit
PB: predicated region body
PF: predicated region fallthrough
CT: control target
= control target key end

     0   :  { %12 = vsyncpa [#allocation3], 0  ;;  %s1092_s24 = smov [#allocation2]   ;;  %s1257_s0 = inlined_call_operand.vmem [shape: f32[16,768], index: 0, kind: input, shape index: {}]   ;;  %s1258_s1 = inlined_call_operand.hbm [shape: bf16[768,128], index: 1, kind: input, shape index: {}]   ;;  %s1259_s2 = inlined_call_operand.vmem [shape: f32[1,128], index: 2, kind: input, shape index: {}]   ;;  %s1260_s3 = inlined_call_operand.vmem [shape: bf16[128,128], index: 3, kind: input, shape index: {}]   ;;  %s1261_s4 = inlined_call_operand.vmem [shape: f32[1,128], index: 4, kind: input, shape index: {}]   ;;  %s1262_s5 = inlined_call_operand.vmem [shape: bf16[128,128], index: 5, kind: input, shape index: {}]   ;;  %s1263_s6 = inlined_call_operand.vmem [shape: f32[1,128], index: 6, kind: input, shape index: {}]   ;;  %s1264_s7 = inlined_call_operand.vmem [shape: f32[16,128], index: 7, kind: output, shape index: {}]  }
   0x1   :  { %s20_s25 = sshll.u32 %s1092_s24, 4  ;;  %s21_s25 = int_to_ptr.vmem [resolvable:$true] %s20_s25 }
   0x2   :  { %s1078_s26 = scalar_lea.vmem %s21_s25, 6144  ;;  %p1083_p1 = scmp.lt.s32.totalorder %s21_s25, %s21_s25 }
   0x3   :  { %p1079_p0 = scmp.ne.s32.totalorder %s21_s25, %s1078_s26  ;;  %p1084_p2 = scmp.lt.s32.totalorder %s1078_s26, %s1078_s26 }
   0x5   :  { %p1085_p3 = por %p1084_p2, %p1083_p1 }
   0x7   :  { %p1086_p4 = pnand %p1085_p3, %p1079_p0 }
   0x9   :  { %1089 = shalt.err (!%p1086_p4)
}
   0xa   :  { %s1093_s27 = smov 64   ;;  %s1094_s28 = smov 4  }
   0xb   :  { %26 = dma.hbm_to_vmem [thread:$0]  %s1258_s1, 6144, %s21_s25, [#allocation3], %s1093_s27, %s1093_s27, %s1094_s28  }
   0xc   :  { %1090 = dma.done.wait [#allocation3], 6144  }
   0xd   :  { %1091 = vsyncadd [#allocation3], 4294961152  ;;  %v1006_v0 = vld [vmem:[#allocation2 + $0x78] sm:$0xff]   ;;  %v1010_v4 = vld [vmem:[#allocation2 + $0x70] sm:$0xff]   ;;  %vm1096_vm0 = vmmov 0  }
   0xe   :  { %v1007_v1 = vld [vmem:[#allocation2 + $0x38] sm:$0xff]   ;;  %877 = vmatprep.subr.bf16.mxu0 %v1006_v0  ;;  %v1011_v5 = vld [vmem:[#allocation2 + $0x30] sm:$0xff]   ;;  %v1014_v8 = vld [vmem:[#allocation2 + $0x68] sm:$0xff]  }
   0xf   :  { %v1008_v2 = vld [vmem:[#allocation2 + $0xf8] sm:$0xff]   ;;  %878 = vmatpush3.bf16.msra.mxu0 %v1007_v1  ;;  %v1012_v6 = vld [vmem:[#allocation2 + $0xf0] sm:$0xff]   ;;  %v1015_v9 = vld [vmem:[#allocation2 + $0x28] sm:$0xff]  }
  0x10   :  { %v1009_v3 = vld [vmem:[#allocation2 + $0xb8] sm:$0xff]   ;;  %899 = vmatprep.subr.bf16.mxu1 %v1008_v2  ;;  %879 = vmatprep.subr.bf16.mxu0 %v1010_v4  ;;  %v1013_v7 = vld [vmem:[#allocation2 + $0xb0] sm:$0xff]   ;;  %v1016_v10 = vld [vmem:[#allocation2 + $0xe8] sm:$0xff]  }
  0x11   :  { %900 = vmatpush3.bf16.msra.mxu1 %v1009_v3  ;;  %v1017_v11 = vld [vmem:[#allocation2 + $0xa8] sm:$0xff]   ;;  %v1018_v12 = vld [vmem:[#allocation2 + $0x60] sm:$0xff]   ;;  %v1022_v16 = vld [vmem:[#allocation2 + $0x58] sm:$0xff]   ;;  %v1095_v3 = vmov 0.0  }
  0x12   :  { %901 = vmatprep.subr.bf16.mxu1 %v1012_v6  ;;  %v1019_v13 = vld [vmem:[#allocation2 + $0x20] sm:$0xff]   ;;  %v1023_v17 = vld [vmem:[#allocation2 + $0x18] sm:$0xff]   ;;  %v1026_v20 = vld [vmem:[#allocation2 + $0x50] sm:$0xff]  }
  0x13   :  { %880 = vmatpush3.bf16.msra.mxu0 %v1011_v5  ;;  %v1020_v14 = vld [vmem:[#allocation2 + $0xe0] sm:$0xff]   ;;  %v1024_v18 = vld [vmem:[#allocation2 + $0xd8] sm:$0xff]   ;;  %v1027_v21 = vld [vmem:[#allocation2 + $0x10] sm:$0xff]  }
  0x14   :  { %881 = vmatprep.subr.bf16.mxu0 %v1014_v8  ;;  %v1021_v15 = vld [vmem:[#allocation2 + $0xa0] sm:$0xff]   ;;  %v1025_v19 = vld [vmem:[#allocation2 + $0x98] sm:$0xff]   ;;  %v1028_v22 = vld [vmem:[#allocation2 + $0xd0] sm:$0xff]  }
  0x15   :  { %902 = vmatpush3.bf16.msra.mxu1 %v1013_v7  ;;  %v1029_v23 = vld [vmem:[#allocation2 + $0x90] sm:$0xff]   ;;  %v1030_v24 = vld [vmem:[#allocation2 + $0x48] sm:$0xff]   ;;  %v1034_v28 = vld [vmem:[#allocation2 + $0x40] sm:$0xff]  }
  0x16   :  { %903 = vmatprep.subr.bf16.mxu1 %v1016_v10  ;;  %v1031_v25 = vld [vmem:[#allocation2 + $0x8] sm:$0xff]   ;;  %v1035_v29 = vld [vmem:[#allocation2] sm:$0xff]   ;;  %v48_v32 = vld [vmem:[%s1257_s0 + $0x38] sm:$0xff] }
  0x17   :  { %882 = vmatpush3.bf16.msra.mxu0 %v1015_v9  ;;  %v1032_v26 = vld [vmem:[#allocation2 + $0xc8] sm:$0xff]   ;;  %v1036_v30 = vld [vmem:[#allocation2 + $0xc0] sm:$0xff]   ;;  %v47_v36 = vld [vmem:[%s1257_s0 + $0x30] sm:$0xff] }
  0x18   :  { %883 = vmatprep.subr.bf16.mxu0 %v1018_v12  ;;  %v1033_v27 = vld [vmem:[#allocation2 + $0x88] sm:$0xff]   ;;  %v1037_v34 = vld [vmem:[#allocation2 + $0x80] sm:$0xff]   ;;  %v1038_v38 = vld [vmem:[#allocation2 + $0x178] sm:$0xff]  }
  0x19   :  { %904 = vmatpush3.bf16.msra.mxu1 %v1017_v11  ;;  %v42_v31 = vld [vmem:[%s1257_s0 + $0x8] sm:$0xff]  ;;  %v41_v35 = vld [vmem:[%s1257_s0] sm:$0xff]  ;;  %v44_v39 = vld [vmem:[%s1257_s0 + $0x18] sm:$0xff] }
  0x1a   :  { %905 = vmatprep.subr.bf16.mxu1 %v1020_v14  ;;  %v54_v33 = vpack.c.bf16 %v48_v32, %v42_v31  ;;  %v53_v37 = vpack.c.bf16 %v47_v36, %v41_v35  ;;  %v50_v40 = vld [vmem:[%s1257_s0 + $0x48] sm:$0xff]  ;;  %v1039_v42 = vld [vmem:[#allocation2 + $0x138] sm:$0xff]   ;;  %v43_v43 = vld [vmem:[%s1257_s0 + $0x10] sm:$0xff] }
  0x1b   :  { %884 = vmatpush3.bf16.msra.mxu0 %v1019_v13  ;;  %v56_v41 = vpack.c.bf16 %v50_v40, %v44_v39  ;;  %v49_v44 = vld [vmem:[%s1257_s0 + $0x40] sm:$0xff]  ;;  %v1040_v46 = vld [vmem:[#allocation2 + $0x170] sm:$0xff]   ;;  %v1042_v48 = vld [vmem:[#allocation2 + $0x168] sm:$0xff]  }
  0x1c   :  { %885 = vmatprep.subr.bf16.mxu0 %v1022_v16  ;;  %482 = vmatprep.mubr.bf16.mxu0 %v54_v33  ;;  %v55_v45 = vpack.c.bf16 %v49_v44, %v43_v43  ;;  %v1041_v47 = vld [vmem:[#allocation2 + $0x130] sm:$0xff]   ;;  %v1043_v49 = vld [vmem:[#allocation2 + $0x128] sm:$0xff]   ;;  %v1044_v50 = vld [vmem:[#allocation2 + $0x160] sm:$0xff]  }
  0x1d   :  { %906 = vmatpush3.bf16.msra.mxu1 %v1021_v15  ;;  %523 = vmatprep.mubr.bf16.mxu1 %v56_v41  ;;  %v1045_v51 = vld [vmem:[#allocation2 + $0x120] sm:$0xff]   ;;  %v1046_v52 = vld [vmem:[#allocation2 + $0x158] sm:$0xff]   ;;  %v1048_v54 = vld [vmem:[#allocation2 + $0x150] sm:$0xff]  }
  0x1e   :  { %907 = vmatprep.subr.bf16.mxu1 %v1024_v18  ;;  %v1047_v53 = vld [vmem:[#allocation2 + $0x118] sm:$0xff]   ;;  %v46_v55 = vld [vmem:[%s1257_s0 + $0x28] sm:$0xff]  ;;  %v1049_v56 = vld [vmem:[#allocation2 + $0x110] sm:$0xff]  }
  0x1f   :  { %886 = vmatpush3.bf16.msra.mxu0 %v1023_v17  ;;  %v52_v57 = vld [vmem:[%s1257_s0 + $0x58] sm:$0xff]  ;;  %v1050_v58 = vld [vmem:[#allocation2 + $0x148] sm:$0xff]   ;;  %v1052_v61 = vld [vmem:[#allocation2 + $0x140] sm:$0xff]  }
  0x20   :  { %887 = vmatprep.subr.bf16.mxu0 %v1026_v20  ;;  %v58_v59 = vpack.c.bf16 %v52_v57, %v46_v55  ;;  %v1051_v60 = vld [vmem:[#allocation2 + $0x108] sm:$0xff]   ;;  %v1053_v62 = vld [vmem:[#allocation2 + $0x100] sm:$0xff]   ;;  %v51_v0 = vld [vmem:[%s1257_s0 + $0x50] sm:$0xff] }
  0x21   :  { %908 = vmatpush3.bf16.msra.mxu1 %v1025_v19  ;;  %v45_v63 = vld [vmem:[%s1257_s0 + $0x20] sm:$0xff]  ;;  %v1054_v2 = vld [vmem:[%s1260_s3 + $0x38] sm:$0xff]   ;;  %v1055_v4 = vld [vmem:[%s1260_s3 + $0x30] sm:$0xff]  }
  0x22   :  { %909 = vmatprep.subr.bf16.mxu1 %v1028_v22  ;;  %v57_v1 = vpack.c.bf16 %v51_v0, %v45_v63  ;;  %v1056_v5 = vld [vmem:[%s1260_s3 + $0x28] sm:$0xff]   ;;  %v1057_v6 = vld [vmem:[%s1260_s3 + $0x20] sm:$0xff]   ;;  %v1058_v7 = vld [vmem:[%s1260_s3 + $0x18] sm:$0xff]  }
  0x23   :  { %888 = vmatpush3.bf16.msra.mxu0 %v1027_v21  ;;  %v1059_v8 = vld [vmem:[%s1260_s3 + $0x10] sm:$0xff]   ;;  %v1060_v9 = vld [vmem:[%s1260_s3 + $0x8] sm:$0xff]   ;;  %v1061_v10 = vld [vmem:[%s1260_s3] sm:$0xff]  }
  0x24   :  { %889 = vmatprep.subr.bf16.mxu0 %v1030_v24  ;;  %v1062_v11 = vld [vmem:[%s1262_s5 + $0x38] sm:$0xff]   ;;  %v1063_v12 = vld [vmem:[%s1262_s5 + $0x30] sm:$0xff]   ;;  %v1064_v13 = vld [vmem:[%s1262_s5 + $0x28] sm:$0xff]  }
  0x25   :  { %910 = vmatpush3.bf16.msra.mxu1 %v1029_v23  ;;  %v1065_v14 = vld [vmem:[%s1262_s5 + $0x20] sm:$0xff]   ;;  %v1066_v15 = vld [vmem:[%s1262_s5 + $0x18] sm:$0xff]   ;;  %v1067_v44 = vld [vmem:[%s1262_s5 + $0x10] sm:$0xff]  }
  0x26   :  { %911 = vmatprep.subr.bf16.mxu1 %v1032_v26  ;;  %v810_v24 = vld [vmem:[%s1259_s2] ss:$0 sm:$0xff] }
  0x27   :  { %890 = vmatpush3.bf16.msra.mxu0 %v1031_v25  ;;  %v868_v57 = vld [vmem:[%s1263_s6] ss:$0 sm:$0xff] }
  0x28   :  { %891 = vmatprep.subr.bf16.mxu0 %v1034_v28 }
  0x29   :  { %912 = vmatpush3.bf16.msra.mxu1 %v1033_v27 }
  0x2a   :  { %913 = vmatprep.subr.bf16.mxu1 %v1036_v30 }
  0x2b   :  { %892 = vmatpush3.bf16.msra.mxu0 %v1035_v29 }
  0x2c   :  { %921 = vmatprep.subr.bf16.mxu0 %v1038_v38 }
  0x2d   :  { %914 = vmatpush3.bf16.msra.mxu1 %v1037_v34 }
  0x2e   :  { %483 = vmatmul.mubr.bf16.vlgmr.msra.gmra.mxu0 %v53_v37  ;;  %961 = vmatprep.subr.bf16.mxu1 %v1095_v3 }
  0x2f   :  { %922 = vmatpush3.bf16.msra.mxu0 %v1039_v42  ;;  %564 = vmatprep.mubr.bf16.mxu0 %v58_v59 }
  0x30   :  { %524 = vmatmul.mubr.bf16.vlgmr.msra.gmra.mxu1 %v55_v45  ;;  %923 = vmatprep.subr.bf16.mxu0 %v1040_v46  ;;  %v1068_v45 = vld [vmem:[%s1262_s5 + $0x8] sm:$0xff]   ;;  %v1069_v46 = vld [vmem:[%s1262_s5] sm:$0xff]  }
  0x31   :  { %962 = vmatpush3.bf16.msra.mxu1 %v1054_v2  ;;  %977 = vmatprep.mubr.msk.bf16.mxu1 %vm1096_vm0, %v1095_v3 }
  0x32   :  { %963 = vmatprep.subr.bf16.mxu1 %v1095_v3 }
  0x33   :  { %924 = vmatpush3.bf16.msra.mxu0 %v1041_v47  ;;  %v859_v47 = vld [vmem:[%s1261_s4] ss:$0 sm:$0xff] }
  0x34   :  { %925 = vmatprep.subr.bf16.mxu0 %v1042_v48 }
  0x35   :  { %964 = vmatpush3.bf16.msra.mxu1 %v1055_v4 }
  0x36   :  { %965 = vmatprep.subr.bf16.mxu1 %v1095_v3 }
  0x37   :  { %926 = vmatpush3.bf16.msra.mxu0 %v1043_v49 }
  0x38   :  { %927 = vmatprep.subr.bf16.mxu0 %v1044_v50 }
  0x39   :  { %966 = vmatpush3.bf16.msra.mxu1 %v1056_v5 }
  0x3a   :  { %967 = vmatprep.subr.bf16.mxu1 %v1095_v3 }
  0x3b   :  { %928 = vmatpush3.bf16.msra.mxu0 %v1045_v51 }
  0x3c   :  { %929 = vmatprep.subr.bf16.mxu0 %v1046_v52 }
  0x3d   :  { %968 = vmatpush3.bf16.msra.mxu1 %v1057_v6 }
  0x3e   :  { %969 = vmatprep.subr.bf16.mxu1 %v1095_v3 }
  0x3f   :  { %930 = vmatpush3.bf16.msra.mxu0 %v1047_v53 }
  0x40   :  { %931 = vmatprep.subr.bf16.mxu0 %v1048_v54 }
  0x41   :  { %970 = vmatpush3.bf16.msra.mxu1 %v1058_v7 }
  0x42   :  { %971 = vmatprep.subr.bf16.mxu1 %v1095_v3 }
  0x43   :  { %932 = vmatpush3.bf16.msra.mxu0 %v1049_v56 }
  0x44   :  { %933 = vmatprep.subr.bf16.mxu0 %v1050_v58 }
  0x45   :  { %972 = vmatpush3.bf16.msra.mxu1 %v1059_v8 }
  0x46   :  { %973 = vmatprep.subr.bf16.mxu1 %v1095_v3 }
  0x47   :  { %934 = vmatpush3.bf16.msra.mxu0 %v1051_v60 }
  0x48   :  { %935 = vmatprep.subr.bf16.mxu0 %v1052_v61 }
  0x49   :  { %974 = vmatpush3.bf16.msra.mxu1 %v1060_v9 }
  0x4a   :  { %975 = vmatprep.subr.bf16.mxu1 %v1095_v3 }
  0x4b   :  { %936 = vmatpush3.bf16.msra.mxu0 %v1053_v62 }
  0x4c   :  { %981 = vmatprep.subr.bf16.mxu0 %v1095_v3 }
  0x4d   :  { %976 = vmatpush3.bf16.msra.mxu1 %v1061_v10 }
  0x4e   :  { %565 = vmatmul.mubr.bf16.vlgmr.msra.gmra.mxu0 %v57_v1 }
  0x4f   :  { %997 = vmatprep.mubr.msk.bf16.mxu0 %vm1096_vm0, %v1095_v3  ;;  %982 = vmatpush3.bf16.msra.mxu0 %v1062_v11 }
  0x50   :  { %983 = vmatprep.subr.bf16.mxu0 %v1095_v3 }
  0x53   :  { %984 = vmatpush3.bf16.msra.mxu0 %v1063_v12 }
  0x54   :  { %985 = vmatprep.subr.bf16.mxu0 %v1095_v3 }
  0x57   :  { %986 = vmatpush3.bf16.msra.mxu0 %v1064_v13 }
  0x58   :  { %987 = vmatprep.subr.bf16.mxu0 %v1095_v3 }
  0x5b   :  { %988 = vmatpush3.bf16.msra.mxu0 %v1065_v14 }
  0x5c   :  { %989 = vmatprep.subr.bf16.mxu0 %v1095_v3 }
  0x5f   :  { %990 = vmatpush3.bf16.msra.mxu0 %v1066_v15 }
  0x60   :  { %991 = vmatprep.subr.bf16.mxu0 %v1095_v3 }
  0x63   :  { %992 = vmatpush3.bf16.msra.mxu0 %v1067_v44 }
  0x64   :  { %993 = vmatprep.subr.bf16.mxu0 %v1095_v3 }
  0x67   :  { %994 = vmatpush3.bf16.msra.mxu0 %v1068_v45 }
  0x68   :  { %995 = vmatprep.subr.bf16.mxu0 %v1095_v3 }
  0x6b   :  { %996 = vmatpush3.bf16.msra.mxu0 %v1069_v46 }
  0xee   :  { %v893_v16 = vpop.f32.mrf.mxu0 }
  0xf0   :  { %v894_v17 = vpop.f32.mrf.mxu0  ;;  %v915_v18 = vpop.f32.mrf.mxu1 }
  0xf1   :  { %v895_v23 = vadd.f32 %v894_v17, %v893_v16 }
  0xf2   :  { %v896_v19 = vpop.f32.mrf.mxu0  ;;  %v916_v20 = vpop.f32.mrf.mxu1 }
  0xf3   :  { %v485_v28 = vadd.f32 %v895_v23, %v810_v24  ;;  %v917_v29 = vadd.f32 %v916_v20, %v915_v18 }
  0xf4   :  { %v897_v21 = vpop.f32.mrf.mxu0  ;;  %v918_v22 = vpop.f32.mrf.mxu1 }
  0xf5   :  { %v898_v25 = vadd.f32 %v897_v21, %v896_v19  ;;  %v526_v35 = vadd.f32 %v917_v29, %v485_v28 }
  0xf6   :  { %v919_v26 = vpop.f32.mrf.mxu1 }
  0xf7   :  { %v488_v31 = vadd.f32 %v898_v25, %v810_v24  ;;  %v920_v32 = vadd.f32 %v919_v26, %v918_v22 }
  0xf9   :  { %v529_v37 = vadd.f32 %v920_v32, %v488_v31 }
 0x10e   :  { %v937_v27 = vpop.f32.mrf.mxu0 }
 0x110   :  { %v938_v30 = vpop.f32.mrf.mxu0 }
 0x111   :  { %v939_v33 = vadd.f32 %v938_v30, %v937_v27 }
 0x112   :  { %v940_v34 = vpop.f32.mrf.mxu0 }
 0x113   :  { %v567_v38 = vadd.f32 %v939_v33, %v526_v35 }
 0x114   :  { %v941_v36 = vpop.f32.mrf.mxu0 }
 0x115   :  { %v942_v39 = vadd.f32 %v941_v36, %v940_v34  ;;  %v573_v41 = vmax.f32 %v567_v38, 0.0 }
 0x117   :  { %v570_v40 = vadd.f32 %v942_v39, %v529_v37 }
 0x119   :  { %v574_v42 = vmax.f32 %v570_v40, 0.0 }
 0x11b   :  { %v575_v43 = vpack.c.bf16 %v574_v42, %v573_v41 }
 0x11d   :  { %978 = vmatmul.mubr.bf16.vlgmr.msra.gmra.mxu1 %v575_v43 }
 0x1dd   :  { %v681_v48 = vpop.f32.mrf.mxu1 }
 0x1de   :  { %v682_v50 = vadd.f32 %v859_v47, %v681_v48 }
 0x1df   :  { %v979_v49 = vpop.f32.mrf.mxu1 }
 0x1e0   :  { %v688_v54 = vmax.f32 %v682_v50, 0.0 }
 0x1e1   :  { %v684_v51 = vpop.f32.mrf.mxu1 }
 0x1e2   :  { %v685_v52 = vadd.f32 %v859_v47, %v684_v51 }
 0x1e3   :  { %v980_v53 = vpop.f32.mrf.mxu1 }
 0x1e4   :  { %v689_v55 = vmax.f32 %v685_v52, 0.0 }
 0x1e6   :  { %v690_v56 = vpack.c.bf16 %v689_v55, %v688_v54 }
 0x1e8   :  { %998 = vmatmul.mubr.bf16.vlgmr.msra.gmra.mxu0 %v690_v56 }
 0x2a8   :  { %v796_v58 = vpop.f32.mrf.mxu0 }
 0x2a9   :  { %v797_v59 = vadd.f32 %v868_v57, %v796_v58 }
 0x2aa   :  { %v999_v60 = vpop.f32.mrf.mxu0 }
 0x2ab   :  { %803 = vst [vmem:[%s1264_s7] sm:$0xff] %v797_v59 }
 0x2ac   :  { %v799_v61 = vpop.f32.mrf.mxu0 }
 0x2ad   :  { %v800_v62 = vadd.f32 %v868_v57, %v799_v61 }
 0x2ae   :  { %v1000_v63 = vpop.f32.mrf.mxu0 }
 0x2af   :  { %804 = vst [vmem:[%s1264_s7 + $0x8] sm:$0xff] %v800_v62 }
 0x2b0   :  { %809 = vsyncpa [#allocation3], 1 }

</bundles_post_ra>
